<compile_context>
chip_gen: v5e
topology: v5e:2x2
jax: 0.10.0
libtpu: 0.0.40
codegen_flags: <defaults>
</compile_context>

<pallas_src>
import functools

import jax
import jax.numpy as jnp
from jax.experimental import pallas as pl
from jax.experimental.pallas import tpu as pltpu

# Fixed module dims (PredNetwork: input_size=128, fc1_units=64, fc2_units=128).
INPUT_SIZE = 128
FC1 = 64
FC2 = 128
LANES = 128


def _round_up(x, m):
    return (x + m - 1) // m * m


def _make_kernel(a_pad):
    """Kernel factory; a_pad (padded action width, multiple of 16) is static."""
    r0 = INPUT_SIZE          # end of fc1 block
    r1 = r0 + a_pad          # end of fc_a block
    r2 = r1 + FC2            # end of fc2 block
    r3 = r2 + FC2            # end of fc3 block

    def kernel(phi_ref, act_ref, w_ref, b_ref, out_ref):
        # Static views into the packed bf16 weight slab (no extra DMAs).
        w1p = w_ref[0:r0, :]     # (128,128): cols 0:64 = fc1.W^T, rest 0
        wap = w_ref[r0:r1, :]    # (a_pad,128): rows<A, cols 0:64 = fc_a.W^T, rest 0
        w2p = w_ref[r1:r2, :]    # (128,128): rows 0:64 = fc2.W^T, rest 0
        w3p = w_ref[r2:r3, :]    # (128,128): cols 0:state_size = fc3.W^T, rest 0

        # bf16 only at the MXU inputs; accumulation and all VPU math stay f32.
        phi = phi_ref[...].astype(jnp.bfloat16)
        act = act_ref[...].astype(jnp.bfloat16)

        # First layer: both results live in lanes 0:64; lanes 64:128 are exact
        # zeros (zero weight columns + zero bias pad), so no garbage lanes.
        z1 = jnp.dot(phi, w1p, preferred_element_type=jnp.float32) + b_ref[0:1, :]
        p = jnp.maximum(z1, 0.0)                                         # relu(fc1)
        a = jnp.dot(act, wap, preferred_element_type=jnp.float32) + b_ref[1:2, :]
        pa = p * a                                                       # lanes 64:128 == 0

        # x = relu(fc2(p * a))
        h = jnp.dot(pa.astype(jnp.bfloat16), w2p,
                    preferred_element_type=jnp.float32) + b_ref[2:3, :]
        h = jnp.maximum(h, 0.0)

        # x = fc3(x) -- written lane-dense (full 128 lanes), sliced in the wrapper
        o = jnp.dot(h.astype(jnp.bfloat16), w3p,
                    preferred_element_type=jnp.float32) + b_ref[3:4, :]
        out_ref[...] = o.astype(out_ref.dtype)

    return kernel


def pack_params(params, action_size, state_size):
    """Pack the 8 Linear params into one bf16 weight slab + one f32 (8,128) bias slab."""
    assert params["w1"].shape == (INPUT_SIZE, FC1)
    assert params["wa"].shape == (action_size, FC1)
    assert params["w2"].shape == (FC1, FC2)
    assert params["w3"].shape == (FC2, state_size)
    assert 2 * FC1 == LANES and FC2 == LANES and state_size <= LANES

    a_pad = _round_up(action_size, 16)   # 16-sublane alignment for bf16 packing

    w1p = jnp.zeros((INPUT_SIZE, LANES), jnp.float32).at[:, :FC1].set(params["w1"])
    wap = jnp.zeros((a_pad, LANES), jnp.float32).at[:action_size, :FC1].set(params["wa"])
    w2p = jnp.zeros((FC2, LANES), jnp.float32).at[:FC1, :].set(params["w2"])
    w3p = jnp.zeros((FC2, LANES), jnp.float32).at[:, :state_size].set(params["w3"])
    # bf16 slab: ~2x DMA bandwidth and single-pass MXU (f32 matmuls decompose
    # into multiple bf16 passes).  Deliberate small numerics deviation.
    w_slab = jnp.concatenate([w1p, wap, w2p, w3p], axis=0).astype(jnp.bfloat16)

    # Bias slab padded to (8,128) for sublane-aligned loads; kept in f32 so the
    # epilogue VPU math stays f32 (required on v5e, free on v6e/v7x).
    b_slab = jnp.zeros((8, LANES), jnp.float32)
    b_slab = b_slab.at[0, :FC1].set(params["b1"][0])           # fc1 bias
    b_slab = b_slab.at[1, :FC1].set(params["ba"][0])           # fc_a bias
    b_slab = b_slab.at[2, :].set(params["b2"][0])              # fc2 bias
    b_slab = b_slab.at[3, :state_size].set(params["b3"][0])    # fc3 bias
    return w_slab, b_slab


@functools.partial(jax.jit, static_argnames=("state_size",))
def pred_network_forward(phi, action, w_slab, b_slab, state_size):
    B = phi.shape[0]
    A = action.shape[1]
    a_pad = w_slab.shape[0] - (INPUT_SIZE + 2 * FC2)
    assert A <= a_pad

    # Batch tiling: big enough to amortize the ~0.35us/step pipeline overhead,
    # balanced so padding is always < one tile, and >=2 steps once there is
    # enough work to shard across v7x's two TensorCores.
    TB_CAP = 2048
    n_tiles = max(1, -(-B // TB_CAP))
    if B >= 1024:
        n_tiles = max(n_tiles, 2)
    TB = _round_up(-(-B // n_tiles), 8)
    Bp = _round_up(B, TB)

    phi_p = phi.astype(jnp.float32)
    if Bp != B:
        phi_p = jnp.pad(phi_p, ((0, Bp - B), (0, 0)))
    # action is tiny (<= 16 lanes): padding it costs ~64 B/row, unlike the old
    # zero-padded (B,256) fused slab which doubled the activation HBM traffic.
    act_p = jnp.zeros((Bp, a_pad), jnp.float32).at[:B, :A].set(action.astype(jnp.float32))

    w_rows = w_slab.shape[0]
    flops = 2 * Bp * (INPUT_SIZE * LANES + a_pad * LANES + LANES * LANES + LANES * LANES)
    bytes_accessed = (4 * Bp * (INPUT_SIZE + a_pad + LANES)   # phi + action + out (f32)
                      + 2 * w_slab.size + 4 * b_slab.size)    # bf16 weights + f32 biases
    cost = pl.CostEstimate(flops=flops, transcendentals=0,
                           bytes_accessed=bytes_accessed)

    out = pl.pallas_call(
        _make_kernel(a_pad),
        out_shape=jax.ShapeDtypeStruct((Bp, LANES), jnp.float32),
        grid=(Bp // TB,),
        in_specs=[
            pl.BlockSpec((TB, INPUT_SIZE), lambda i: (i, 0)),   # phi:    tiled over batch
            pl.BlockSpec((TB, a_pad), lambda i: (i, 0)),        # action: tiled over batch
            pl.BlockSpec((w_rows, LANES), lambda i: (0, 0)),    # weight slab: VMEM-resident
            pl.BlockSpec((8, LANES), lambda i: (0, 0)),         # bias slab:   VMEM-resident
        ],
        out_specs=pl.BlockSpec((TB, LANES), lambda i: (i, 0)),
        compiler_params=pltpu.CompilerParams(
            dimension_semantics=("parallel",),   # batch grid sharded over v7x's 2 TCs
            vmem_limit_bytes=32 * 1024 * 1024,   # tiles ~5 MiB << v7x's 64 MiB VMEM
        ),
        cost_estimate=cost,
    )(phi_p, act_p, w_slab, b_slab)

    # Lane-dense kernel output -> slice back to the true (B, state_size).
    # TODO(synk): consumers that can take the 128-lane padded slab should do so
    # and skip this slice (it re-reads ~8x the useful output bytes).
    return out[:B, :state_size]


def init_params(key, state_size, action_size, fc1_units=FC1, fc2_units=FC2,
                input_size=INPUT_SIZE):
    """PyTorch-Linear-style init: U(-1/sqrt(fan_in), 1/sqrt(fan_in)).
    Weights stored transposed (in, out); biases as (1, out)."""
    def linear(k, fan_in, fan_out):
        kw, kb = jax.random.split(k)
        bound = 1.0 / jnp.sqrt(fan_in)
        w = jax.random.uniform(kw, (fan_in, fan_out), jnp.float32, -bound, bound)
        b = jax.random.uniform(kb, (1, fan_out), jnp.float32, -bound, bound)
        return w, b

    k1, ka, k2, k3 = jax.random.split(key, 4)
    w1, b1 = linear(k1, input_size, fc1_units)     # fc1
    wa, ba = linear(ka, action_size, fc1_units)    # fc_a
    w2, b2 = linear(k2, fc1_units, fc2_units)      # fc2
    w3, b3 = linear(k3, fc2_units, state_size)     # fc3
    return {"w1": w1, "b1": b1, "wa": wa, "ba": ba,
            "w2": w2, "b2": b2, "w3": w3, "b3": b3}


def reference_forward_f32(phi, action, params):
    """Pure-f32 JAX reference (matches the PyTorch module's math)."""
    p = jnp.maximum(phi @ params["w1"] + params["b1"], 0.0)
    a = action.astype(jnp.float32) @ params["wa"] + params["ba"]
    h = jnp.maximum((p * a) @ params["w2"] + params["b2"], 0.0)
    return h @ params["w3"] + params["b3"]


def reference_forward_bf16(phi, action, params):
    """Reference with the same bf16-weight / f32-accumulate dots as the kernel."""
    def d(x, w):
        return jnp.dot(x.astype(jnp.bfloat16), w.astype(jnp.bfloat16),
                       preferred_element_type=jnp.float32)
    p = jnp.maximum(d(phi, params["w1"]) + params["b1"], 0.0)
    a = d(action.astype(jnp.float32), params["wa"]) + params["ba"]
    h = jnp.maximum(d(p * a, params["w2"]) + params["b2"], 0.0)
    return d(h, params["w3"]) + params["b3"]


if __name__ == "__main__":
    batch = 8
    state_size = 16
    action_size = 4

    key = jax.random.PRNGKey(0)
    kp, kphi, kact = jax.random.split(key, 3)

    params = init_params(kp, state_size=state_size, action_size=action_size)
    w_slab, b_slab = pack_params(params, action_size, state_size)

    phi = jax.random.normal(kphi, (batch, INPUT_SIZE), jnp.float32)
    # action is integer-ish in the torch module (.float() cast); emulate that.
    action = jax.random.randint(kact, (batch, action_size), 0, 2).astype(jnp.float32)

    out = pred_network_forward(phi, action, w_slab, b_slab, state_size)
    out = jax.block_until_ready(out)

    assert out.shape == (batch, state_size)
    # Exact-math check against a reference using the same bf16 dot inputs.
    ref_bf16 = reference_forward_bf16(phi, action, params)
    assert jnp.allclose(out, ref_bf16, atol=2e-3, rtol=2e-3), "mismatch vs bf16-dot reference"
    # Loose check against the full-f32 PyTorch-style math (documents the
    # deliberate bf16-weight numerics deviation).
    ref_f32 = reference_forward_f32(phi, action, params)
    assert jnp.allclose(out, ref_f32, atol=5e-2, rtol=5e-2), "mismatch vs f32 reference"
    print("KERNEL_OK")
</pallas_src>

<mosaic_0001>
module attributes {stable_mosaic.version = 11 : i64} {
  func.func @kernel(%arg0: i32, %arg1: memref<8x128xf32, #tpu.memory_space<vmem>>, %arg2: memref<8x16xf32, #tpu.memory_space<vmem>>, %arg3: memref<400x128xbf16, #tpu.memory_space<vmem>>, %arg4: memref<8x128xf32, #tpu.memory_space<vmem>>, %arg5: memref<8x128xf32, #tpu.memory_space<vmem>>) attributes {dimension_semantics = [#tpu.dimension_semantics<parallel>], iteration_bounds = array<i64: 1>, scalar_prefetch = 0 : i64, scratch_operands = 0 : i64, tpu.core_type = #tpu.core_type<tc>, window_params = [{transform_indices = @transform_0, window_bounds = array<i64: 8, 128>}, {transform_indices = @transform_1, window_bounds = array<i64: 8, 16>}, {pipeline_mode = #tpu.pipeline_mode<synchronous>, transform_indices = @transform_2, window_bounds = array<i64: 400, 128>}, {pipeline_mode = #tpu.pipeline_mode<synchronous>, transform_indices = @transform_3, window_bounds = array<i64: 8, 128>}, {transform_indices = @transform_4, window_bounds = array<i64: 8, 128>}]} {
    %c0 = arith.constant 0 : index
    %c0_0 = arith.constant 0 : index
    %0 = vector.load %arg3[%c0, %c0_0] : memref<400x128xbf16, #tpu.memory_space<vmem>>, vector<128x128xbf16>
    %c128 = arith.constant 128 : index
    %c0_1 = arith.constant 0 : index
    %1 = vector.load %arg3[%c128, %c0_1] : memref<400x128xbf16, #tpu.memory_space<vmem>>, vector<16x128xbf16>
    %c144 = arith.constant 144 : index
    %c0_2 = arith.constant 0 : index
    %2 = vector.load %arg3[%c144, %c0_2] : memref<400x128xbf16, #tpu.memory_space<vmem>>, vector<128x128xbf16>
    %c272 = arith.constant 272 : index
    %c0_3 = arith.constant 0 : index
    %3 = vector.load %arg3[%c272, %c0_3] : memref<400x128xbf16, #tpu.memory_space<vmem>>, vector<128x128xbf16>
    %c0_4 = arith.constant 0 : index
    %c0_5 = arith.constant 0 : index
    %4 = vector.load %arg1[%c0_4, %c0_5] : memref<8x128xf32, #tpu.memory_space<vmem>>, vector<8x128xf32>
    %5 = arith.truncf %4 : vector<8x128xf32> to vector<8x128xbf16>
    %c0_6 = arith.constant 0 : index
    %c0_7 = arith.constant 0 : index
    %6 = vector.load %arg2[%c0_6, %c0_7] : memref<8x16xf32, #tpu.memory_space<vmem>>, vector<8x16xf32>
    %7 = arith.truncf %6 : vector<8x16xf32> to vector<8x16xbf16>
    %cst = arith.constant dense<0.000000e+00> : vector<8x128xf32>
    %8 = tpu.matmul %5, %0, %cst {dimension_numbers = #tpu.dot_dimension_numbers<[1], [0], [0], [1], [0, 0, 1, 1], [], []>} : vector<8x128xbf16>, vector<128x128xbf16>, vector<8x128xf32> -> vector<8x128xf32>
    %c0_8 = arith.constant 0 : index
    %c0_9 = arith.constant 0 : index
    %9 = vector.load %arg4[%c0_8, %c0_9] : memref<8x128xf32, #tpu.memory_space<vmem>>, vector<1x128xf32>
    %10 = vector.broadcast %9 : vector<1x128xf32> to vector<8x128xf32>
    %11 = arith.addf %8, %10 : vector<8x128xf32>
    %cst_10 = arith.constant 0.000000e+00 : f32
    %12 = vector.broadcast %cst_10 : f32 to vector<8x128xf32>
    %13 = arith.maximumf %11, %12 : vector<8x128xf32>
    %cst_11 = arith.constant dense<0.000000e+00> : vector<8x128xf32>
    %14 = tpu.matmul %7, %1, %cst_11 {dimension_numbers = #tpu.dot_dimension_numbers<[1], [0], [0], [1], [0, 0, 1, 1], [], []>} : vector<8x16xbf16>, vector<16x128xbf16>, vector<8x128xf32> -> vector<8x128xf32>
    %c1 = arith.constant 1 : index
    %c0_12 = arith.constant 0 : index
    %15 = vector.load %arg4[%c1, %c0_12] : memref<8x128xf32, #tpu.memory_space<vmem>>, vector<1x128xf32>
    %16 = vector.broadcast %15 : vector<1x128xf32> to vector<8x128xf32>
    %17 = arith.addf %14, %16 : vector<8x128xf32>
    %18 = arith.mulf %13, %17 : vector<8x128xf32>
    %19 = arith.truncf %18 : vector<8x128xf32> to vector<8x128xbf16>
    %cst_13 = arith.constant dense<0.000000e+00> : vector<8x128xf32>
    %20 = tpu.matmul %19, %2, %cst_13 {dimension_numbers = #tpu.dot_dimension_numbers<[1], [0], [0], [1], [0, 0, 1, 1], [], []>} : vector<8x128xbf16>, vector<128x128xbf16>, vector<8x128xf32> -> vector<8x128xf32>
    %c2 = arith.constant 2 : index
    %c0_14 = arith.constant 0 : index
    %21 = vector.load %arg4[%c2, %c0_14] : memref<8x128xf32, #tpu.memory_space<vmem>>, vector<1x128xf32>
    %22 = vector.broadcast %21 : vector<1x128xf32> to vector<8x128xf32>
    %23 = arith.addf %20, %22 : vector<8x128xf32>
    %cst_15 = arith.constant 0.000000e+00 : f32
    %24 = vector.broadcast %cst_15 : f32 to vector<8x128xf32>
    %25 = arith.maximumf %23, %24 : vector<8x128xf32>
    %26 = arith.truncf %25 : vector<8x128xf32> to vector<8x128xbf16>
    %cst_16 = arith.constant dense<0.000000e+00> : vector<8x128xf32>
    %27 = tpu.matmul %26, %3, %cst_16 {dimension_numbers = #tpu.dot_dimension_numbers<[1], [0], [0], [1], [0, 0, 1, 1], [], []>} : vector<8x128xbf16>, vector<128x128xbf16>, vector<8x128xf32> -> vector<8x128xf32>
    %c3 = arith.constant 3 : index
    %c0_17 = arith.constant 0 : index
    %28 = vector.load %arg4[%c3, %c0_17] : memref<8x128xf32, #tpu.memory_space<vmem>>, vector<1x128xf32>
    %29 = vector.broadcast %28 : vector<1x128xf32> to vector<8x128xf32>
    %30 = arith.addf %27, %29 : vector<8x128xf32>
    %c0_18 = arith.constant 0 : index
    %c0_19 = arith.constant 0 : index
    %31 = vector.load %arg5[%c0_18, %c0_19] : memref<8x128xf32, #tpu.memory_space<vmem>>, vector<8x128xf32>
    tpu.vector_store %arg5[%c0_18, %c0_19], %30 {strides = array<i32>} : memref<8x128xf32, #tpu.memory_space<vmem>>, vector<8x128xf32>,
    return
  }
  func.func @transform_0(%arg0: i32) -> (i32, i32) {
    %c0_i32 = arith.constant 0 : i32
    %c0_i32_0 = arith.constant 0 : i32
    return %arg0, %c0_i32 : i32, i32
  }
  func.func @transform_1(%arg0: i32) -> (i32, i32) {
    %c0_i32 = arith.constant 0 : i32
    %c0_i32_0 = arith.constant 0 : i32
    return %arg0, %c0_i32 : i32, i32
  }
  func.func @transform_2(%arg0: i32) -> (i32, i32) {
    %c0_i32 = arith.constant 0 : i32
    %c0_i32_0 = arith.constant 0 : i32
    %c0_i32_1 = arith.constant 0 : i32
    return %c0_i32, %c0_i32_0 : i32, i32
  }
  func.func @transform_3(%arg0: i32) -> (i32, i32) {
    %c0_i32 = arith.constant 0 : i32
    %c0_i32_0 = arith.constant 0 : i32
    %c0_i32_1 = arith.constant 0 : i32
    return %c0_i32, %c0_i32_0 : i32, i32
  }
  func.func @transform_4(%arg0: i32) -> (i32, i32) {
    %c0_i32 = arith.constant 0 : i32
    %c0_i32_0 = arith.constant 0 : i32
    return %arg0, %c0_i32 : i32, i32
  }
}

</mosaic_0001>

<bundles_post_ra>
// kernel: pred_network_forward.1
= control target key start
LH: loop header
LB: loop body
LE: loop exit
PB: predicated region body
PF: predicated region fallthrough
CT: control target
= control target key end

     0   :  { %9 = vsyncpa [#allocation3], 0  ;;  %s565_s0 = inlined_call_operand.vmem [shape: f32[8,128], index: 0, kind: input, shape index: {}]   ;;  %s566_s1 = inlined_call_operand.vmem [shape: f32[8,16], index: 1, kind: input, shape index: {}]   ;;  %s567_s2 = inlined_call_operand.hbm [shape: bf16[400,128], index: 2, kind: input, shape index: {}]   ;;  %s568_s3 = inlined_call_operand.vmem [shape: f32[8,128], index: 3, kind: input, shape index: {}]   ;;  %s569_s4 = inlined_call_operand.hbm [shape: f32[8,128], index: 4, kind: output, shape index: {}]  }
   0x1   :  { %10 = vsyncpa [#allocation4], 0  ;;  %s19_s17 = sshll.u32 %s567_s2, 4  ;;  %s512_s18 = smov [#allocation2]   ;;  %s20_s17 = int_to_ptr.hbm [resolvable:$true] %s19_s17 }
   0x2   :  { %s21_s19 = sshll.u32 %s512_s18, 4  ;;  %s513_s20 = smov 64   ;;  %s22_s19 = int_to_ptr.vmem [resolvable:$true] %s21_s19 }
   0x3   :  { %s514_s21 = smov 4  }
   0x4   :  { %27 = dma.hbm_to_vmem [thread:$0]  %s20_s17, 3200, %s22_s19, [#allocation3], %s513_s20, %s513_s20, %s514_s21  }
   0x5   :  { %508 = dma.done.wait [#allocation3], 3200  }
   0x6   :  { %509 = vsyncadd [#allocation3], 4294964096  ;;  %v434_v0 = vld [vmem:[#allocation2 + $0x38] sm:$0xff]  ;;  %v433_v1 = vld [vmem:[#allocation2 + $0x30] sm:$0xff]  ;;  %vm161_vm0 = vcmask 130048   ;;  %s515_s5 = smov [#allocation5]  }
   0x7   :  { %139 = vmatpush.bf16.msra.mxu0 %v434_v0  ;;  %v435_v2 = vld [vmem:[#allocation2 + $0x40] sm:$0xff]  ;;  %v442_v6 = vld [vmem:[#allocation2 + $0x78] sm:$0xff]  ;;  %v432_v7 = vld [vmem:[#allocation2 + $0x28] sm:$0xff]  ;;  %s314_s6 = sshll.u32 %s515_s5, 4  ;;  %s316_s9 = sshll.u32 %s569_s4, 4  ;;  %s315_s6 = int_to_ptr.vmem [resolvable:$true] %s314_s6  ;;  %s317_s9 = int_to_ptr.hbm [resolvable:$true] %s316_s9 }
   0x8   :  { %v87_v3 = vld [vmem:[%s566_s1] sm:$0xff]  ;;  %172 = vmatpush.bf16.msra.mxu1 %v435_v2  ;;  %v441_v8 = vld [vmem:[#allocation2 + $0x70] sm:$0xff]  ;;  %v440_v10 = vld [vmem:[#allocation2 + $0x68] sm:$0xff] }
   0x9   :  { %v88_v4 = vpack.c.bf16 %v87_v3, %v87_v3  ;;  %v443_v5 = vld [vmem:[#allocation2 + $0x80] sm:$0xff]  ;;  %v430_v11 = vld [vmem:[#allocation2 + $0x18] sm:$0xff]  ;;  %v429_v12 = vld [vmem:[#allocation2 + $0x10] sm:$0xff] }
   0xa   :  { %230 = vmatpush.bf16.msra.mxu2 %v443_v5  ;;  %v431_v9 = vld [vmem:[#allocation2 + $0x20] sm:$0xff]  ;;  %v428_v13 = vld [vmem:[#allocation2 + $0x8] sm:$0xff]  ;;  %v438_v18 = vld [vmem:[#allocation2 + $0x58] sm:$0xff] }
   0xb   :  { %140 = vmatpush.bf16.msra.mxu0 %v433_v1  ;;  %362 = vmatmul.msk.bf16.vlgmr.msra.gmra.mxu1 %vm161_vm0, %v88_v4  ;;  %v427_v14 = vld [vmem:[#allocation2] sm:$0xff]  ;;  %v437_v19 = vld [vmem:[#allocation2 + $0x50] sm:$0xff]  ;;  %v436_v20 = vld [vmem:[#allocation2 + $0x48] sm:$0xff] }
   0xc   :  { %v85_v15 = vld [vmem:[%s565_s0] sm:$0xff]  ;;  %v450_v23 = vld [vmem:[#allocation2 + $0xb8] sm:$0xff]  ;;  %v449_v25 = vld [vmem:[#allocation2 + $0xb0] sm:$0xff] }
   0xd   :  { %v86_v16 = vpack.c.bf16 %v85_v15, %v85_v15  ;;  %v439_v17 = vld [vmem:[#allocation2 + $0x60] sm:$0xff]  ;;  %v448_v26 = vld [vmem:[#allocation2 + $0xa8] sm:$0xff]  ;;  %v446_v28 = vld [vmem:[#allocation2 + $0x98] sm:$0xff] }
   0xe   :  { %231 = vmatpush.bf16.msra.mxu2 %v442_v6  ;;  %v451_v22 = vld [vmem:[#allocation2 + $0xc0] sm:$0xff]  ;;  %v445_v38 = vld [vmem:[#allocation2 + $0x90] sm:$0xff]  ;;  %v444_v39 = vld [vmem:[#allocation2 + $0x88] sm:$0xff] }
   0xf   :  { %141 = vmatpush.bf16.msra.mxu0 %v432_v7  ;;  %295 = vmatpush.bf16.msra.mxu3 %v451_v22  ;;  %v447_v27 = vld [vmem:[#allocation2 + $0xa0] sm:$0xff] }
  0x10   :  { %v456_v29 = vld [vmem:[%s568_s3 + $0x1] ss:$0 sm:$0xff]  ;;  %v457_v30 = vld [vmem:[%s568_s3] ss:$0 sm:$0xff]  ;;  %v458_v40 = vld [vmem:[%s568_s3 + $0x2] ss:$0 sm:$0xff] }
  0x11   :  { %v459_v46 = vld [vmem:[%s568_s3 + $0x3] ss:$0 sm:$0xff] }
  0x12   :  { %232 = vmatpush.bf16.msra.mxu2 %v441_v8 }
  0x13   :  { %142 = vmatpush.bf16.msra.mxu0 %v431_v9  ;;  %296 = vmatpush.bf16.msra.mxu3 %v450_v23 }
  0x16   :  { %233 = vmatpush.bf16.msra.mxu2 %v440_v10 }
  0x17   :  { %143 = vmatpush.bf16.msra.mxu0 %v430_v11  ;;  %297 = vmatpush.bf16.msra.mxu3 %v449_v25 }
  0x1a   :  { %234 = vmatpush.bf16.msra.mxu2 %v439_v17 }
  0x1b   :  { %144 = vmatpush.bf16.msra.mxu0 %v429_v12  ;;  %298 = vmatpush.bf16.msra.mxu3 %v448_v26 }
  0x1e   :  { %235 = vmatpush.bf16.msra.mxu2 %v438_v18 }
  0x1f   :  { %145 = vmatpush.bf16.msra.mxu0 %v428_v13  ;;  %299 = vmatpush.bf16.msra.mxu3 %v447_v27 }
  0x22   :  { %236 = vmatpush.bf16.msra.mxu2 %v437_v19 }
  0x23   :  { %146 = vmatpush.bf16.msra.mxu0 %v427_v14  ;;  %300 = vmatpush.bf16.msra.mxu3 %v446_v28 }
  0x26   :  { %147 = vmatmul.bf16.vlgmr.msra.gmra.mxu0 %v86_v16  ;;  %237 = vmatpush.bf16.msra.mxu2 %v436_v20 }
  0x27   :  { %301 = vmatpush.bf16.msra.mxu3 %v445_v38 }
  0x2b   :  { %302 = vmatpush.bf16.msra.mxu3 %v444_v39 }
  0x88   :  { %v174_v21 = vpop.f32.mrf.mxu1 }
  0x89   :  { %v175_v32 = vadd.f32 %v456_v29, %v174_v21 }
  0x90   :  { %v176_v24 = vpop.f32.mrf.mxu1 }
  0xa3   :  { %v148_v31 = vpop.f32.mrf.mxu0 }
  0xa4   :  { %v149_v33 = vadd.f32 %v457_v30, %v148_v31 }
  0xa6   :  { %v152_v34 = vmax.f32 %v149_v33, 0.0 }
  0xa8   :  { %v178_v35 = vmul.f32 %v175_v32, %v152_v34 }
  0xaa   :  { %v179_v36 = vpack.c.bf16 %v178_v35, %v178_v35 }
  0xab   :  { %v150_v37 = vpop.f32.mrf.mxu0 }
  0xac   :  { %238 = vmatmul.bf16.vlgmr.msra.gmra.mxu2 %v179_v36 }
 0x12f   :  { %v239_v41 = vpop.f32.mrf.mxu2 }
 0x130   :  { %v240_v42 = vadd.f32 %v458_v40, %v239_v41 }
 0x132   :  { %v243_v43 = vmax.f32 %v240_v42, 0.0 }
 0x134   :  { %v244_v44 = vpack.c.bf16 %v243_v43, %v243_v43 }
 0x136   :  { %303 = vmatmul.bf16.vlgmr.msra.gmra.mxu3 %v244_v44 }
 0x137   :  { %v241_v45 = vpop.f32.mrf.mxu2 }
 0x1b9   :  { %v304_v47 = vpop.f32.mrf.mxu3 }
 0x1ba   :  { %v305_v48 = vadd.f32 %v459_v46, %v304_v47 }
 0x1bc   :  { %308 = vst [vmem:[#allocation5] sm:$0xff] %v305_v48 }
 0x1bd   :  { %319 = dma.vmem_to_hbm [thread:$0]  %s315_s6, 128, %s317_s9, [#allocation4]  }
 0x1c1   :  { %v306_v49 = vpop.f32.mrf.mxu3 }
 0x1c2   :  { %510 = dma.done.wait [#allocation4], 128  }
 0x1c3   :  { %511 = vsyncadd [#allocation4], 4294967168 }
 0x1c4   :  { %324 = vsyncpa [#allocation3], 1 }
 0x1c5   :  { %325 = vsyncpa [#allocation4], 1 }

</bundles_post_ra>
